<compile_context>
chip_gen: v7x
topology: tpu7x:2x2x1
jax: 0.10.0
libtpu: 0.0.40
codegen_flags: <defaults>
</compile_context>

<pallas_src>
import functools

import jax
import jax.numpy as jnp
from jax import lax
from jax.experimental import pallas as pl
from jax.experimental.pallas import tpu as pltpu


# ---------------------------------------------------------------------------
# helpers
# ---------------------------------------------------------------------------
def _round_up(x, m):
    return ((x + m - 1) // m) * m


def _pick_block_rows(A, N, Dp, feat_bytes, budget_bytes):
    """Largest anchor-row tile (multiple of 8, capped at 256) fitting a VMEM budget."""
    # resident contrast tile (double-buffered) + contrast labels
    fixed = 2 * N * Dp * feat_bytes + 2 * N * 4
    # per anchor row: double-buffered feature row + label + ~8 live f32 (row, N) temps
    per_row = 2 * Dp * feat_bytes + 2 * 4 + 8 * N * 4
    cap = (budget_bytes - fixed) // max(per_row, 1)
    cap = max(8, (cap // 8) * 8)
    return int(max(8, min(256, _round_up(A, 8), cap)))


def _loss_rows(logits, w, is_self, loss_scale):
    """Per-anchor-row SupCon loss. logits/w/is_self: (TA, N). Returns (TA, 1) f32."""
    row_max = jnp.max(logits, axis=1, keepdims=True)        # includes self (torch parity)
    logits = logits - row_max
    exp_l = jnp.exp(logits)
    denom = jnp.sum(jnp.where(is_self, 0.0, exp_l), axis=1, keepdims=True)
    log_denom = jnp.log(denom)
    cnt = jnp.sum(w, axis=1, keepdims=True)                  # (TA, 1)
    s = jnp.sum(w * logits, axis=1, keepdims=True)           # (TA, 1)
    # sum(w * (logits - log_denom)) / sum(w) == (s - cnt*log_denom) / cnt
    mean_log_prob_pos = (s - cnt * log_denom) * pl.reciprocal(cnt, approx=True)
    return loss_scale * mean_log_prob_pos                    # (TA, 1)


# ---------------------------------------------------------------------------
# kernels
# ---------------------------------------------------------------------------
def _supcon_label_kernel(a_ref, c_ref, la_ref, lc_ref, o_ref, *,
                         block_rows, num_valid_rows, inv_temp, loss_scale):
    """Labels / SimCLR path: positive mask reconstructed in-kernel from labels."""
    i = pl.program_id(0)
    a = a_ref[...]
    a = a * jnp.asarray(inv_temp, dtype=a.dtype)             # fold 1/T before matmul
    logits = lax.dot_general(a, c_ref[...],
                             dimension_numbers=(((1,), (1,)), ((), ())),
                             preferred_element_type=jnp.float32)   # (TA, N) f32
    ta, n = logits.shape
    grow = i * block_rows + lax.broadcasted_iota(jnp.int32, (ta, n), 0)
    col = lax.broadcasted_iota(jnp.int32, (ta, n), 1)
    is_self = grow == col
    pos = jnp.logical_and(la_ref[...] == lc_ref[...], jnp.logical_not(is_self))
    w = pos.astype(jnp.float32)

    rows = _loss_rows(logits, w, is_self, loss_scale)         # (TA, 1)
    valid = (i * block_rows
             + lax.broadcasted_iota(jnp.int32, (ta, 1), 0)) < num_valid_rows
    rows = jnp.where(valid, rows, 0.0)                        # drop padded anchor rows
    partial = jnp.sum(rows, keepdims=True)                    # (1, 1)
    o_ref[...] = jnp.broadcast_to(partial.reshape(1, 1, 1), o_ref.shape)


def _supcon_mask_kernel(a_ref, c_ref, m_ref, o_ref, *,
                        block_rows, num_valid_rows, inv_temp, loss_scale):
    """Explicit user-mask path (mask streamed per anchor-row tile)."""
    i = pl.program_id(0)
    a = a_ref[...]
    a = a * jnp.asarray(inv_temp, dtype=a.dtype)
    logits = lax.dot_general(a, c_ref[...],
                             dimension_numbers=(((1,), (1,)), ((), ())),
                             preferred_element_type=jnp.float32)
    ta, n = logits.shape
    grow = i * block_rows + lax.broadcasted_iota(jnp.int32, (ta, n), 0)
    col = lax.broadcasted_iota(jnp.int32, (ta, n), 1)
    is_self = grow == col
    w = jnp.where(is_self, 0.0, m_ref[...].astype(jnp.float32))

    rows = _loss_rows(logits, w, is_self, loss_scale)
    valid = (i * block_rows
             + lax.broadcasted_iota(jnp.int32, (ta, 1), 0)) < num_valid_rows
    rows = jnp.where(valid, rows, 0.0)
    partial = jnp.sum(rows, keepdims=True)
    o_ref[...] = jnp.broadcast_to(partial.reshape(1, 1, 1), o_ref.shape)


# ---------------------------------------------------------------------------
# wrapper
# ---------------------------------------------------------------------------
def supcon_loss(features, labels=None, mask=None, *, temperature=0.07,
                contrast_mode='all', base_temperature=0.07, block_rows=None,
                vmem_budget_bytes=40 * 1024 * 1024):
    features = jnp.asarray(features)
    if features.ndim < 3:
        raise ValueError('`features` needs to be [bsz, n_views, ...]')
    if features.ndim > 3:
        features = features.reshape(features.shape[0], features.shape[1], -1)
    if features.dtype not in (jnp.float32, jnp.bfloat16):
        features = features.astype(jnp.float32)
    if labels is not None and mask is not None:
        raise ValueError('Cannot define both `labels` and `mask`')

    bsz, n_views, d = features.shape
    # torch.cat(torch.unbind(features, dim=1), dim=0)  ->  view-major concat
    contrast_feature = jnp.transpose(features, (1, 0, 2)).reshape(n_views * bsz, d)
    if contrast_mode == 'one':
        anchor_feature = features[:, 0, :]
        anchor_count = 1
    elif contrast_mode == 'all':
        anchor_feature = contrast_feature
        anchor_count = n_views
    else:
        raise ValueError(f'Unknown mode: {contrast_mode}')
    A = anchor_count * bsz
    N = n_views * bsz

    # Pad contraction dim to a multiple of 128 (MXU width); zero padding is a no-op.
    Dp = _round_up(d, 128)
    if Dp != d:
        anchor_feature = jnp.pad(anchor_feature, ((0, 0), (0, Dp - d)))
        contrast_feature = jnp.pad(contrast_feature, ((0, 0), (0, Dp - d)))

    feat_bytes = jnp.dtype(anchor_feature.dtype).itemsize
    ta = _pick_block_rows(A, N, Dp, feat_bytes, vmem_budget_bytes)
    if block_rows is not None:
        ta = min(ta, max(8, _round_up(int(block_rows), 8)))
    A_pad = _round_up(A, ta)
    G = A_pad // ta
    if A_pad != A:
        anchor_feature = jnp.pad(anchor_feature, ((0, A_pad - A), (0, 0)))

    inv_temp = 1.0 / float(temperature)
    loss_scale = -(float(temperature) / float(base_temperature))
    common = dict(block_rows=ta, num_valid_rows=A,
                  inv_temp=inv_temp, loss_scale=loss_scale)

    feat_spec_a = pl.BlockSpec((ta, Dp), lambda i: (i, 0))
    feat_spec_c = pl.BlockSpec((N, Dp), lambda i: (0, 0))       # VMEM-resident contrast
    out_spec = pl.BlockSpec((1, 8, 128), lambda i: (i, 0, 0))   # lane-dense partials
    out_shape = jax.ShapeDtypeStruct((G, 8, 128), jnp.float32)
    cparams = pltpu.CompilerParams(dimension_semantics=("parallel",),
                                   vmem_limit_bytes=64 * 1024 * 1024)

    if mask is None:
        if labels is None:
            # SimCLR: eye(bsz) positive mask == equality of distinct labels.
            base_labels = jnp.arange(bsz, dtype=jnp.int32)
        else:
            base_labels = jnp.asarray(labels).reshape(-1).astype(jnp.int32)
            if base_labels.shape[0] != bsz:
                raise ValueError('Num of labels does not match num of features')
        clab = jnp.tile(base_labels, n_views)                   # (N,)
        alab = clab if anchor_count == n_views else base_labels  # (A,)
        if A_pad != A:
            alab = jnp.pad(alab, (0, A_pad - A), constant_values=-1)
        alab = alab.reshape(A_pad, 1)
        clab = clab.reshape(1, N)

        kernel = functools.partial(_supcon_label_kernel, **common)
        grid_spec = pltpu.PrefetchScalarGridSpec(
            num_scalar_prefetch=0, grid=(G,),
            in_specs=[feat_spec_a, feat_spec_c,
                      pl.BlockSpec((ta, 1), lambda i: (i, 0)),
                      pl.BlockSpec((1, N), lambda i: (0, 0))],
            out_specs=out_spec)
        partials = pl.pallas_call(kernel, out_shape=out_shape, grid_spec=grid_spec,
                                  compiler_params=cparams)(
            anchor_feature, contrast_feature, alab, clab)
    else:
        base_mask = jnp.asarray(mask, jnp.float32)
        if base_mask.shape != (bsz, bsz):
            raise ValueError('mask must be [bsz, bsz]')
        mask_tiled = jnp.tile(base_mask, (anchor_count, n_views))   # (A, N)
        if A_pad != A:
            mask_tiled = jnp.pad(mask_tiled, ((0, A_pad - A), (0, 0)))

        kernel = functools.partial(_supcon_mask_kernel, **common)
        grid_spec = pltpu.PrefetchScalarGridSpec(
            num_scalar_prefetch=0, grid=(G,),
            in_specs=[feat_spec_a, feat_spec_c,
                      pl.BlockSpec((ta, N), lambda i: (i, 0))],
            out_specs=out_spec)
        partials = pl.pallas_call(kernel, out_shape=out_shape, grid_spec=grid_spec,
                                  compiler_params=cparams)(
            anchor_feature, contrast_feature, mask_tiled)

    # loss.view(anchor_count, batch_size).mean() == sum over all A rows / A
    return jnp.sum(partials[:, 0, 0]) / A


# ---------------------------------------------------------------------------
# pure-JAX reference (mirrors the PyTorch forward)
# ---------------------------------------------------------------------------
def _supcon_loss_ref(features, labels=None, mask=None, *, temperature=0.07,
                     contrast_mode='all', base_temperature=0.07):
    features = jnp.asarray(features, jnp.float32)
    bsz, n_views, _ = features.shape
    if labels is None and mask is None:
        base_mask = jnp.eye(bsz, dtype=jnp.float32)
    elif labels is not None:
        labels = jnp.asarray(labels).reshape(-1, 1)
        base_mask = (labels == labels.T).astype(jnp.float32)
    else:
        base_mask = jnp.asarray(mask, jnp.float32)
    cf = jnp.transpose(features, (1, 0, 2)).reshape(n_views * bsz, -1)
    if contrast_mode == 'one':
        af, anchor_count = features[:, 0, :], 1
    else:
        af, anchor_count = cf, n_views
    A, N = af.shape[0], cf.shape[0]
    logits = (af @ cf.T) / temperature
    logits = logits - jnp.max(logits, axis=1, keepdims=True)
    m = jnp.tile(base_mask, (anchor_count, n_views))
    logits_mask = jnp.ones((A, N), jnp.float32).at[jnp.arange(A), jnp.arange(A)].set(0.0)
    m = m * logits_mask
    exp_logits = jnp.exp(logits) * logits_mask
    log_prob = logits - jnp.log(exp_logits.sum(1, keepdims=True))
    mean_log_prob_pos = (m * log_prob).sum(1) / m.sum(1)
    loss = -(temperature / base_temperature) * mean_log_prob_pos
    return loss.mean()


# ---------------------------------------------------------------------------
# demo / self-test
# ---------------------------------------------------------------------------
if __name__ == "__main__":
    key = jax.random.PRNGKey(0)
    k1, k2, k3, k4 = jax.random.split(key, 4)

    # Looser tolerance: approx EUP reciprocal (~2^-12 rel) + reassociated 1/T scaling.
    tol = dict(rtol=5e-3, atol=5e-3)

    # Config 1: supervised labels, SimCLR, and explicit-mask paths (single tile).
    bsz, n_views, dim = 8, 2, 32
    feats = jax.random.normal(k1, (bsz, n_views, dim), dtype=jnp.float32)
    feats = feats / jnp.linalg.norm(feats, axis=-1, keepdims=True)
    labels = jax.random.randint(k2, (bsz,), 0, 4)

    loss = jax.block_until_ready(supcon_loss(feats, labels=labels))
    ref = _supcon_loss_ref(feats, labels=labels)
    assert jnp.allclose(loss, ref, **tol), (loss, ref)

    loss_simclr = jax.block_until_ready(supcon_loss(feats))
    ref_simclr = _supcon_loss_ref(feats)
    assert jnp.allclose(loss_simclr, ref_simclr, **tol), (loss_simclr, ref_simclr)

    m = (labels[:, None] == labels[None, :]).astype(jnp.float32)
    loss_mask = jax.block_until_ready(supcon_loss(feats, mask=m))
    assert jnp.allclose(loss_mask, ref, **tol), (loss_mask, ref)

    # Config 2: exercises row tiling (grid > 1), anchor-row padding and D padding.
    bsz2, n_views2, dim2 = 6, 2, 40
    feats2 = jax.random.normal(k3, (bsz2, n_views2, dim2), dtype=jnp.float32)
    feats2 = feats2 / jnp.linalg.norm(feats2, axis=-1, keepdims=True)
    labels2 = jax.random.randint(k4, (bsz2,), 0, 3)
    loss2 = jax.block_until_ready(supcon_loss(feats2, labels=labels2, block_rows=8))
    ref2 = _supcon_loss_ref(feats2, labels=labels2)
    assert jnp.allclose(loss2, ref2, **tol), (loss2, ref2)

    print("KERNEL_OK")
</pallas_src>

<mosaic_0001>
module attributes {stable_mosaic.version = 11 : i64} {
  func.func @_supcon_label_kernel(%arg0: i32, %arg1: memref<16x128xf32, #tpu.memory_space<vmem>>, %arg2: memref<16x128xf32, #tpu.memory_space<vmem>>, %arg3: memref<16x1xi32, #tpu.memory_space<vmem>>, %arg4: memref<1x16xi32, #tpu.memory_space<vmem>>, %arg5: memref<1x8x128xf32, #tpu.memory_space<vmem>>) attributes {dimension_semantics = [#tpu.dimension_semantics<parallel>], iteration_bounds = array<i64: 1>, scalar_prefetch = 0 : i64, scratch_operands = 0 : i64, tpu.core_type = #tpu.core_type<tc>, window_params = [{transform_indices = @transform_0, window_bounds = array<i64: 16, 128>}, {pipeline_mode = #tpu.pipeline_mode<synchronous>, transform_indices = @transform_1, window_bounds = array<i64: 16, 128>}, {transform_indices = @transform_2, window_bounds = array<i64: 16, 1>}, {pipeline_mode = #tpu.pipeline_mode<synchronous>, transform_indices = @transform_3, window_bounds = array<i64: 1, 16>}, {transform_indices = @transform_4, window_bounds = array<i64: 1, 8, 128>}]} {
    %c0 = arith.constant 0 : index
    %c0_0 = arith.constant 0 : index
    %0 = vector.load %arg1[%c0, %c0_0] : memref<16x128xf32, #tpu.memory_space<vmem>>, vector<16x128xf32>
    %cst = arith.constant 14.2857141 : f32
    %1 = vector.broadcast %cst : f32 to vector<16x128xf32>
    %2 = arith.mulf %0, %1 : vector<16x128xf32>
    %c0_1 = arith.constant 0 : index
    %c0_2 = arith.constant 0 : index
    %3 = vector.load %arg2[%c0_1, %c0_2] : memref<16x128xf32, #tpu.memory_space<vmem>>, vector<16x128xf32>
    %cst_3 = arith.constant dense<0.000000e+00> : vector<16x16xf32>
    %4 = tpu.matmul %2, %3, %cst_3 {dimension_numbers = #tpu.dot_dimension_numbers<[1], [1], [0], [0], [0, 0, 1, 0], [], []>} : vector<16x128xf32>, vector<16x128xf32>, vector<16x16xf32> -> vector<16x16xf32>
    %c16_i32 = arith.constant 16 : i32
    %5 = arith.muli %arg0, %c16_i32 : i32
    %6 = tpu.iota {dimensions = array<i32: 0>} : vector<16x16xi32>
    %7 = vector.broadcast %5 : i32 to vector<16x16xi32>
    %8 = arith.addi %7, %6 : vector<16x16xi32>
    %9 = tpu.iota {dimensions = array<i32: 1>} : vector<16x16xi32>
    %10 = arith.cmpi eq, %8, %9 : vector<16x16xi32>
    %c0_4 = arith.constant 0 : index
    %c0_5 = arith.constant 0 : index
    %11 = vector.load %arg3[%c0_4, %c0_5] : memref<16x1xi32, #tpu.memory_space<vmem>>, vector<16x1xi32>
    %c0_6 = arith.constant 0 : index
    %c0_7 = arith.constant 0 : index
    %12 = vector.load %arg4[%c0_6, %c0_7] : memref<1x16xi32, #tpu.memory_space<vmem>>, vector<1x16xi32>
    %13 = vector.broadcast %11 : vector<16x1xi32> to vector<16x16xi32>
    %14 = vector.broadcast %12 : vector<1x16xi32> to vector<16x16xi32>
    %15 = arith.cmpi eq, %13, %14 : vector<16x16xi32>
    %cst_8 = arith.constant dense<true> : vector<16x16xi1>
    %16 = arith.xori %10, %cst_8 : vector<16x16xi1>
    %17 = arith.andi %15, %16 : vector<16x16xi1>
    %18 = arith.extui %17 : vector<16x16xi1> to vector<16x16xi32>
    %19 = arith.sitofp %18 : vector<16x16xi32> to vector<16x16xf32>
    %cst_9 = arith.constant dense<0xFF800000> : vector<16xf32>
    %20 = vector.multi_reduction <maximumf>, %4, %cst_9 [1] : vector<16x16xf32> to vector<16xf32>
    %21 = vector.shape_cast %20 : vector<16xf32> to vector<16x1xf32>
    %22 = vector.broadcast %21 : vector<16x1xf32> to vector<16x16xf32>
    %23 = arith.subf %4, %22 : vector<16x16xf32>
    %24 = math.exp %23 : vector<16x16xf32>
    %cst_10 = arith.constant 0.000000e+00 : f32
    %25 = vector.broadcast %cst_10 : f32 to vector<16x16xf32>
    %26 = arith.select %10, %25, %24 : vector<16x16xi1>, vector<16x16xf32>
    %cst_11 = arith.constant dense<0.000000e+00> : vector<16xf32>
    %27 = vector.multi_reduction <add>, %26, %cst_11 [1] : vector<16x16xf32> to vector<16xf32>
    %28 = vector.shape_cast %27 : vector<16xf32> to vector<16x1xf32>
    %29 = math.log %28 : vector<16x1xf32>
    %cst_12 = arith.constant dense<0.000000e+00> : vector<16xf32>
    %30 = vector.multi_reduction <add>, %19, %cst_12 [1] : vector<16x16xf32> to vector<16xf32>
    %31 = vector.shape_cast %30 : vector<16xf32> to vector<16x1xf32>
    %32 = arith.mulf %19, %23 : vector<16x16xf32>
    %cst_13 = arith.constant dense<0.000000e+00> : vector<16xf32>
    %33 = vector.multi_reduction <add>, %32, %cst_13 [1] : vector<16x16xf32> to vector<16xf32>
    %34 = vector.shape_cast %33 : vector<16xf32> to vector<16x1xf32>
    %35 = arith.mulf %31, %29 : vector<16x1xf32>
    %36 = arith.subf %34, %35 : vector<16x1xf32>
    %37 = tpu.reciprocal %31 {approx = true} : vector<16x1xf32> -> vector<16x1xf32>
    %38 = arith.mulf %36, %37 : vector<16x1xf32>
    %cst_14 = arith.constant -1.000000e+00 : f32
    %39 = vector.broadcast %cst_14 : f32 to vector<16x1xf32>
    %40 = arith.mulf %39, %38 : vector<16x1xf32>
    %c16_i32_15 = arith.constant 16 : i32
    %41 = arith.muli %arg0, %c16_i32_15 : i32
    %42 = tpu.iota {dimensions = array<i32: 0>} : vector<16x1xi32>
    %43 = vector.broadcast %41 : i32 to vector<16x1xi32>
    %44 = arith.addi %43, %42 : vector<16x1xi32>
    %c16_i32_16 = arith.constant 16 : i32
    %45 = vector.broadcast %c16_i32_16 : i32 to vector<16x1xi32>
    %46 = arith.cmpi slt, %44, %45 : vector<16x1xi32>
    %cst_17 = arith.constant 0.000000e+00 : f32
    %47 = vector.broadcast %cst_17 : f32 to vector<16x1xf32>
    %48 = arith.select %46, %40, %47 : vector<16x1xi1>, vector<16x1xf32>
    %49 = vector.shape_cast %48 : vector<16x1xf32> to vector<1x16x1xf32>
    %cst_18 = arith.constant dense<0.000000e+00> : vector<1xf32>
    %50 = vector.multi_reduction <add>, %49, %cst_18 [1, 2] : vector<1x16x1xf32> to vector<1xf32>
    %51 = vector.shape_cast %50 : vector<1xf32> to vector<1x1x1xf32>
    %52 = vector.extract %51[0, 0, 0] : f32 from vector<1x1x1xf32>
    %53 = vector.broadcast %52 : f32 to vector<1x1xf32>
    %54 = vector.shape_cast %53 : vector<1x1xf32> to vector<1x1x1xf32>
    %55 = vector.shape_cast %54 : vector<1x1x1xf32> to vector<1x1x1xf32>
    %56 = vector.broadcast %55 : vector<1x1x1xf32> to vector<1x8x128xf32>
    %c0_19 = arith.constant 0 : index
    %c0_20 = arith.constant 0 : index
    %c0_21 = arith.constant 0 : index
    %57 = vector.load %arg5[%c0_19, %c0_20, %c0_21] : memref<1x8x128xf32, #tpu.memory_space<vmem>>, vector<1x8x128xf32>
    tpu.vector_store %arg5[%c0_19, %c0_20, %c0_21], %56 {strides = array<i32>} : memref<1x8x128xf32, #tpu.memory_space<vmem>>, vector<1x8x128xf32>,
    return
  }
  func.func @transform_0(%arg0: i32) -> (i32, i32) {
    %c0_i32 = arith.constant 0 : i32
    %c0_i32_0 = arith.constant 0 : i32
    return %arg0, %c0_i32 : i32, i32
  }
  func.func @transform_1(%arg0: i32) -> (i32, i32) {
    %c0_i32 = arith.constant 0 : i32
    %c0_i32_0 = arith.constant 0 : i32
    %c0_i32_1 = arith.constant 0 : i32
    return %c0_i32, %c0_i32_0 : i32, i32
  }
  func.func @transform_2(%arg0: i32) -> (i32, i32) {
    %c0_i32 = arith.constant 0 : i32
    %c0_i32_0 = arith.constant 0 : i32
    return %arg0, %c0_i32 : i32, i32
  }
  func.func @transform_3(%arg0: i32) -> (i32, i32) {
    %c0_i32 = arith.constant 0 : i32
    %c0_i32_0 = arith.constant 0 : i32
    %c0_i32_1 = arith.constant 0 : i32
    return %c0_i32, %c0_i32_0 : i32, i32
  }
  func.func @transform_4(%arg0: i32) -> (i32, i32, i32) {
    %c0_i32 = arith.constant 0 : i32
    %c0_i32_0 = arith.constant 0 : i32
    %c0_i32_1 = arith.constant 0 : i32
    return %arg0, %c0_i32, %c0_i32_0 : i32, i32, i32
  }
}

</mosaic_0001>

<bundles_post_ra>
// kernel: tpu_custom_call.1
= control target key start
LH: loop header
LB: loop body
LE: loop exit
PB: predicated region body
PF: predicated region fallthrough
CT: control target
= control target key end

     0   :  { %9 = vsyncpa [#allocation3], 0  ;;  %s552_s0 = inlined_call_operand.hbm [shape: f32[16,128], index: 0, kind: input, shape index: {}]   ;;  %s553_s1 = inlined_call_operand.hbm [shape: f32[16,128], index: 1, kind: input, shape index: {}]   ;;  %s554_s2 = inlined_call_operand.hbm [shape: s32[16,1], index: 2, kind: input, shape index: {}]   ;;  %s555_s3 = inlined_call_operand.hbm [shape: s32[1,16], index: 3, kind: input, shape index: {}]   ;;  %s556_s4 = inlined_call_operand.hbm [shape: f32[1,8,128], index: 4, kind: output, shape index: {}]  }
   0x1   :  { %10 = vsyncpa [#allocation6], 0 }
   0x2   :  { %11 = vsyncpa [#allocation9], 0 }
   0x3   :  { %12 = vsyncpa [#allocation4], 0  ;;  %s433_s15 = smov [#allocation5]   ;;  %s434_s17 = smov [#allocation2]  }
   0x4   :  { %s30_s16 = sshll.u32 %s433_s15, 4  ;;  %s18_s18 = sshll.u32 %s434_s17, 4  ;;  %s31_s16 = int_to_ptr.vmem [resolvable:$true] %s30_s16  ;;  %s468_s18 = int_to_ptr.vmem [resolvable:$true] %s18_s18 }
   0x5   :  { %s315_s21 = scalar_lea.hbm %s553_s1, 256 }
   0x6   :  { %p316_p0 = scmp.ne.s32.totalorder %s553_s1, %s315_s21  ;;  %p319_p1 = scmp.lt.u32.totalorder %s315_s21, %s553_s1 }
   0x8   :  { %p321_p2 = pnand %p319_p1, %p316_p0 }
   0xa   :  { %324 = shalt.err (!%p321_p2)
}
   0xb   :  { %s325_s26 = scalar_lea.vmem %s31_s16, 256  ;;  %p330_p4 = scmp.lt.s32.totalorder %s31_s16, %s31_s16 }
   0xc   :  { %p326_p3 = scmp.ne.s32.totalorder %s31_s16, %s325_s26  ;;  %p331_p5 = scmp.lt.s32.totalorder %s325_s26, %s325_s26 }
   0xe   :  { %p332_p6 = por %p331_p5, %p330_p4 }
  0x10   :  { %p333_p7 = pnand %p332_p6, %p326_p3 }
  0x12   :  { %336 = shalt.err (!%p333_p7)
}
  0x13   :  { %s435_s27 = smov 128   ;;  %s436_s28 = smov 8  }
  0x14   :  { %36 = dma.hbm_to_vmem [thread:$0]  %s553_s1, 256, %s31_s16, [#allocation6], %s435_s27, %s435_s27, %s436_s28  }
  0x15   :  { %s337_s7 = scalar_lea.hbm %s552_s0, 256 }
  0x16   :  { %p338_p8 = scmp.ne.s32.totalorder %s552_s0, %s337_s7  ;;  %p341_p9 = scmp.lt.u32.totalorder %s337_s7, %s552_s0 }
  0x18   :  { %p343_p10 = pnand %p341_p9, %p338_p8 }
  0x1a   :  { %346 = shalt.err (!%p343_p10)
}
  0x1b   :  { %s347_s12 = scalar_lea.vmem %s468_s18, 256  ;;  %p352_p12 = scmp.lt.s32.totalorder %s468_s18, %s468_s18 }
  0x1c   :  { %p348_p11 = scmp.ne.s32.totalorder %s468_s18, %s347_s12  ;;  %p353_p13 = scmp.lt.s32.totalorder %s347_s12, %s347_s12 }
  0x1e   :  { %p354_p0 = por %p353_p13, %p352_p12 }
  0x20   :  { %p355_p1 = pnand %p354_p0, %p348_p11 }
  0x22   :  { %358 = shalt.err (!%p355_p1)
}
  0x23   :  { %24 = dma.hbm_to_vmem [thread:$0]  %s552_s0, 256, %s468_s18, [#allocation3], %s435_s27, %s435_s27, %s436_s28  }
  0x24   :  { %s437_s14 = smov [#allocation7]   ;;  %s438_s16 = smov [#allocation8]  }
  0x25   :  { %s42_s15 = sshll.u32 %s437_s14, 4  ;;  %s55_s17 = sshll.u32 %s438_s16, 4  ;;  %s43_s15 = int_to_ptr.vmem [resolvable:$true] %s42_s15  ;;  %s56_s17 = int_to_ptr.vmem [resolvable:$true] %s55_s17 }
  0x26   :  { %s359_s21 = scalar_lea.hbm %s554_s2, 256 }
  0x27   :  { %p360_p2 = scmp.ne.s32.totalorder %s554_s2, %s359_s21  ;;  %p363_p3 = scmp.lt.u32.totalorder %s359_s21, %s554_s2 }
  0x29   :  { %p365_p4 = pnand %p363_p3, %p360_p2 }
  0x2b   :  { %368 = shalt.err (!%p365_p4)
}
  0x2c   :  { %s369_s0 = scalar_lea.vmem %s43_s15, 256  ;;  %p374_p6 = scmp.lt.s32.totalorder %s43_s15, %s43_s15 }
  0x2d   :  { %p370_p5 = scmp.ne.s32.totalorder %s43_s15, %s369_s0  ;;  %p375_p7 = scmp.lt.s32.totalorder %s369_s0, %s369_s0 }
  0x2f   :  { %p376_p8 = por %p375_p7, %p374_p6 }
  0x31   :  { %p377_p9 = pnand %p376_p8, %p370_p5 }
  0x33   :  { %380 = shalt.err (!%p377_p9)
}
  0x34   :  { %48 = dma.hbm_to_vmem [thread:$0]  %s554_s2, 256, %s43_s15, [#allocation6], %s435_s27, %s435_s27, %s436_s28  }
  0x35   :  { %s381_s5 = scalar_lea.hbm %s555_s3, 16 }
  0x36   :  { %p382_p10 = scmp.ne.s32.totalorder %s555_s3, %s381_s5  ;;  %p385_p11 = scmp.lt.u32.totalorder %s381_s5, %s555_s3 }
  0x38   :  { %p387_p12 = pnand %p385_p11, %p382_p10 }
  0x3a   :  { %390 = shalt.err (!%p387_p12)
}
  0x3b   :  { %s391_s10 = scalar_lea.vmem %s56_s17, 16  ;;  %s395_s11 = scalar_lea.vmem %s56_s17, 32 }
  0x3c   :  { %p392_p13 = scmp.ne.s32.totalorder %s56_s17, %s391_s10  ;;  %p396_p0 = scmp.lt.s32.totalorder %s56_s17, %s56_s17 }
  0x3d   :  { %p397_p1 = scmp.lt.s32.totalorder %s395_s11, %s391_s10 }
  0x3f   :  { %p398_p2 = por %p397_p1, %p396_p0 }
  0x41   :  { %p399_p3 = pnand %p398_p2, %p392_p13 }
  0x43   :  { %402 = shalt.err (!%p399_p3)
}
  0x44   :  { %58 = dma.hbm_to_vmem [thread:$0]  %s555_s3, 16, %s56_s17, [#allocation9]  }
  0x45   :  { %425 = dma.done.wait [#allocation3], 256  }
  0x46   :  { %426 = vsyncadd [#allocation3], 4294967040 }
  0x47   :  { %427 = dma.done.wait [#allocation6], 512  }
  0x48   :  { %428 = vsyncadd [#allocation6], 4294966784 }
  0x49   :  { %429 = dma.done.wait [#allocation9], 16  }
  0x4a   :  { %430 = vsyncadd [#allocation9], 4294967280  ;;  %v75_v0 = vld [vmem:[#allocation5] sm:$0xff]  ;;  %v76_v1 = vld [vmem:[#allocation5 + $0x8] sm:$0xff]  ;;  %v439_v8 = vmov 0   ;;  %vm186_vm0 = vcmask 130048   ;;  %v153_v15 = vlaneseq }
  0x4b   :  { %v71_v2 = vld [vmem:[#allocation2] sm:$0xff]  ;;  %v285_v3 = vpack.c.bf16 %v76_v1, %v75_v0  ;;  %v72_v5 = vld [vmem:[#allocation2 + $0x8] sm:$0xff]  ;;  %301 = vset.pattern.permute.xlu1 %v439_v8  ;;  %302 = vset.pattern.permute.xlu0 %v439_v8  ;;  %v271_v23 = vld [vmem:[#allocation8] ss:$0 sm:$0xff]  ;;  %vm440_vm2 = vmmov 1   ;;  %v441_v30 = vmov 0.0  }
  0x4c   :  { %v73_v4 = vmul.f32 14.285714, %v71_v2  ;;  %v74_v6 = vmul.f32 14.285714, %v72_v5  ;;  %v163_v7 = vld [vmem:[#allocation7] sm:$0xff]  ;;  %v164_v9 = vld [vmem:[#allocation7 + $0x8] sm:$0xff] }
  0x4d   :  { %286 = vmatprep.subr.bf16.mxu0 %v285_v3  ;;  %167 = vperm.xlu1 %301, %v163_v7   ;;  %v154_v19 = vshrl.u32 %v153_v15, 7  ;;  %v160_v20 = vand.u32 127, %v153_v15  ;;  %vm239_vm10 = vcmask 7168   ;;  %s442_s3 = smov [#allocation10]  }
  0x4e   :  { %282 = vmatprep.mubr.f32.mxu0 %v73_v4  ;;  %288 = vmatpush3.bf16.xpose.msra.mxu0 %v285_v3  ;;  %s260_s28 = sshll.u32 %s442_s3, 4  ;;  %s261_s28 = int_to_ptr.vmem [resolvable:$true] %s260_s28 }
  0x4f   :  { %vm161_vm1 = vcmp.eq.s32.totalorder %v154_v19, %v160_v20  ;;  %v155_v25 = vadd.s32 8, %v154_v19  ;;  %s403_s1 = scalar_lea.vmem %s261_s28, 128  ;;  %p408_p5 = scmp.lt.s32.totalorder %s261_s28, %s261_s28 }
  0x50   :  { %vm178_vm3 = vmxor %vm161_vm1, %vm440_vm2  ;;  %p404_p4 = scmp.ne.s32.totalorder %s261_s28, %s403_s1  ;;  %p409_p6 = scmp.lt.s32.totalorder %s403_s1, %s403_s1 }
  0x51   :  { %170 = vperm.xlu1 %301, %v164_v9   ;;  %vm162_vm6 = vcmp.eq.s32.totalorder %v155_v25, %v160_v20 }
  0x52   :  { %vm179_vm7 = vmxor %vm162_vm6, %vm440_vm2  ;;  %p410_p7 = por %p409_p6, %p408_p5 }
  0x54   :  { %p411_p8 = pnand %p410_p7, %p404_p4 }
  0x55   :  { %283 = vmatmul.mubr.f32.vlgmr.msra.gmra.mrb[0].mxu0 %v74_v6 }
  0xcc   :  { %v168_v24 = vpop.permute.xlu1 %167 }
  0xcd   :  { %vm176_vm4 = vcmp.eq.s32.totalorder %v168_v24, %v271_v23 }
  0xce   :  { %vm180_vm5 = vmand %vm176_vm4, %vm178_vm3 }
  0xcf   :  { %v272_v31 = vsel %vm180_vm5, 1.0, %v441_v30 }
  0xd0   :  { %v171_v27 = vpop.permute.xlu1 %170  ;;  %v211_v33 = vsel %vm186_vm0, %v272_v31, 0.0 }
  0xd1   :  { %vm177_vm8 = vcmp.eq.s32.totalorder %v171_v27, %v271_v23 }
  0xd2   :  { %vm181_vm9 = vmand %vm177_vm8, %vm179_vm7 }
  0xd3   :  { %v273_v36 = vsel %vm181_vm9, 1.0, %v441_v30 }
  0xd4   :  { %v214_v37 = vsel %vm186_vm0, %v273_v36, 0.0 }
 0x128   :  { %v284_v10 = vpop.f32.mrb[0].mxu0 }
 0x129   :  { %v143_v11 = vpop.f32.mrb[1].mxu0  ;;  %v190_v13 = vsel %vm186_vm0, %v284_v10, -inf }
 0x12a   :  { %v187_v12 = vsel %vm186_vm0, %v143_v11, -inf }
 0x12b   :  { %188 = vmax.xlane.f32.xlu0 %v187_v12 }
 0x12f   :  { %191 = vmax.xlane.f32.xlu0 %v190_v13 }
 0x1b8   :  { %v189_v14 = vpop.xlane.xlu0 %188 }
 0x1b9   :  { %v193_v16 = vsub.f32 %v143_v11, %v189_v14 }
 0x1bb   :  { %v195_v17 = vmul.f32 1.442695, %v193_v16  ;;  %v217_v38 = vmul.f32 %v272_v31, %v193_v16 }
 0x1bc   :  { %v192_v18 = vpop.xlane.xlu0 %191 }
 0x1bd   :  { %303 = vpow2.f32 %v195_v17  ;;  %v194_v21 = vsub.f32 %v284_v10, %v192_v18  ;;  %v219_v39 = vsel %vm186_vm0, %v217_v38, 0.0 }
 0x1bf   :  { %v197_v22 = vmul.f32 1.442695, %v194_v21  ;;  %v218_v40 = vmul.f32 %v273_v36, %v194_v21 }
 0x1c1   :  { %305 = vpow2.f32 %v197_v22  ;;  %v222_v41 = vsel %vm186_vm0, %v218_v40, 0.0 }
 0x1c7   :  { %v304_v26 = vpop.eup %303 }
 0x1c8   :  { %v199_v28 = vsel %vm161_vm1, 0.0, %v304_v26 }
 0x1c9   :  { %v201_v29 = vsel %vm186_vm0, %v199_v28, 0.0 }
 0x1ca   :  { %202 = vadd.xlane.f32.xlu0 %v201_v29 }
 0x1cb   :  { %v306_v32 = vpop.eup %305 }
 0x1cc   :  { %v200_v34 = vsel %vm162_vm6, 0.0, %v306_v32 }
 0x1cd   :  { %v204_v35 = vsel %vm186_vm0, %v200_v34, 0.0 }
 0x1ce   :  { %212 = vadd.xlane.f32.xlu0 %v211_v33  ;;  %205 = vadd.xlane.f32.xlu1 %v204_v35 }
 0x1d2   :  { %215 = vadd.xlane.f32.xlu0 %v214_v37 }
 0x1d6   :  { %220 = vadd.xlane.f32.xlu0 %v219_v39 }
 0x1da   :  { %223 = vadd.xlane.f32.xlu0 %v222_v41 }
 0x257   :  { %v203_v42 = vpop.xlane.xlu0 %202 }
 0x258   :  { %307 = vlog2.f32 %v203_v42 }
 0x25b   :  { %v206_v43 = vpop.xlane.xlu1 %205  ;;  %v213_v44 = vpop.xlane.xlu0 %212 }
 0x25c   :  { %309 = vlog2.f32 %v206_v43 }
 0x25d   :  { %311 = vrcp.f32 %v213_v44 }
 0x25f   :  { %v216_v45 = vpop.xlane.xlu0 %215 }
 0x260   :  { %313 = vrcp.f32 %v216_v45 }
 0x262   :  { %v308_v46 = vpop.eup %307 }
 0x263   :  { %v208_v47 = vmul.f32 0.6931472, %v308_v46  ;;  %v221_v48 = vpop.xlane.xlu0 %220 }
 0x265   :  { %v225_v49 = vmul.f32 %v213_v44, %v208_v47 }
 0x266   :  { %v310_v50 = vpop.eup %309 }
 0x267   :  { %v312_v51 = vpop.eup %311  ;;  %v210_v52 = vmul.f32 0.6931472, %v310_v50  ;;  %v227_v53 = vsub.f32 %v221_v48, %v225_v49  ;;  %v224_v56 = vpop.xlane.xlu0 %223 }
 0x269   :  { %v226_v54 = vmul.f32 %v216_v45, %v210_v52  ;;  %v231_v55 = vmul.f32 %v312_v51, %v227_v53 }
 0x26a   :  { %v314_v58 = vpop.eup %313 }
 0x26b   :  { %v228_v57 = vsub.f32 %v224_v56, %v226_v54  ;;  %v233_v59 = vmul.f32 -1.0, %v231_v55 }
 0x26d   :  { %v232_v60 = vmul.f32 %v314_v58, %v228_v57  ;;  %v240_v62 = vsel %vm239_vm10, %v233_v59, 0.0 }
 0x26f   :  { %v234_v61 = vmul.f32 -1.0, %v232_v60 }
 0x271   :  { %v241_v63 = vsel %vm239_vm10, %v234_v61, 0.0 }
 0x272   :  { %v242_v0 = vadd.f32 %v241_v63, %v240_v62 }
 0x274   :  { %243 = vadd.xlane.f32.xlu0 %v242_v0 }
 0x301   :  { %v244_v1 = vpop.xlane.xlu0 %243 }
 0x302   :  { %v245_v2 = vrot.slane %v244_v1, 4 }
 0x304   :  { %v246_v3 = vadd.f32 %v245_v2, %v244_v1 }
 0x306   :  { %v247_v4 = vrot.slane %v246_v3, 2 }
 0x308   :  { %v248_v5 = vadd.f32 %v247_v4, %v246_v3 }
 0x30a   :  { %v249_v6 = vrot.slane %v248_v5, 1 }
 0x30c   :  { %v250_v7 = vadd.f32 %v249_v6, %v248_v5 }
 0x30e   :  { %289 = vpush %v250_v7 }
 0x33f   :  { %s290_s12 = spop %289 }
 0x340   :  { %v252_v8 = vstv %s290_s12 }
 0x341   :  { %253 = vst [vmem:[#allocation10] sm:$0xff] %v252_v8 }
 0x342   :  { %414 = shalt.err (!%p411_p8)
}
 0x343   :  { %s415_s15 = scalar_lea.hbm %s556_s4, 128 }
 0x344   :  { %p416_p9 = scmp.ne.s32.totalorder %s556_s4, %s415_s15  ;;  %p419_p10 = scmp.lt.u32.totalorder %s415_s15, %s556_s4 }
 0x346   :  { %p421_p11 = pnand %p419_p10, %p416_p9 }
 0x348   :  { %424 = shalt.err (!%p421_p11)
}
 0x349   :  { %263 = dma.vmem_to_hbm [thread:$0]  %s261_s28, 128, %s556_s4, [#allocation4]  }
 0x34a   :  { %431 = dma.done.wait [#allocation4], 128  }
 0x34b   :  { %432 = vsyncadd [#allocation4], 4294967168 }
 0x34c   :  { %267 = vsyncpa [#allocation3], 1 }
 0x34d   :  { %268 = vsyncpa [#allocation6], 1 }
 0x34e   :  { %269 = vsyncpa [#allocation9], 1 }
 0x34f   :  { %270 = vsyncpa [#allocation4], 1 }

</bundles_post_ra>
